<compile_context>
chip_gen: v6e
topology: v6e:2x2x1
jax: 0.10.0
libtpu: 0.0.40
codegen_flags: <defaults>
</compile_context>

<pallas_src>
import functools

import jax
import jax.numpy as jnp
from jax import lax
from jax.experimental import pallas as pl
from jax.experimental.pallas import tpu as pltpu


# ---------------------------------------------------------------------------
# fused kernel: A_hat resident in VMEM, prop loop unrolled.
# Used grid-less (whole problem) or with a feature-column "parallel" grid.
# ---------------------------------------------------------------------------
def _unfolding_fused_kernel(a_ref, x_ref, out_ref, *, alp, prop_step):
    a_hat = a_ref[...]                   # bf16, degree normalization pre-folded
    x = x_ref[...]                       # f32 (Np, fcols)
    beta = 1.0 - alp

    def body(_, y):
        # bf16 MXU matmul with f32 accumulation; residual mix stays f32 (VPU).
        z = jnp.dot(a_hat, y.astype(jnp.bfloat16), preferred_element_type=jnp.float32)
        return alp * z + beta * x

    # prop_step is a small static constant -> unroll for LLO scheduler visibility.
    out_ref[...] = lax.fori_loop(0, prop_step, body, x, unroll=True)


# ---------------------------------------------------------------------------
# tiled per-prop-step kernel: Y_new = alp * (A_hat @ Y) + (1 - alp) * X
# grid = (row tiles, feature tiles, reduction) with reduction last ("arbitrary")
# ---------------------------------------------------------------------------
def _prop_step_kernel(a_ref, y_ref, x_ref, o_ref, acc_ref, *, alp):
    @pl.when(pl.program_id(2) == 0)
    def _init():
        acc_ref[...] = jnp.zeros_like(acc_ref)

    # A_hat and Y arrive as bf16 tiles; accumulate in f32.
    acc_ref[...] += jnp.dot(a_ref[...], y_ref[...],
                            preferred_element_type=jnp.float32)

    @pl.when(pl.program_id(2) == pl.num_programs(2) - 1)
    def _finalize():
        o_ref[...] = (alp * acc_ref[...] + (1.0 - alp) * x_ref[...]).astype(o_ref.dtype)


# ---------------------------------------------------------------------------
# helpers
# ---------------------------------------------------------------------------
def _round_up(v, m):
    return (v + m - 1) // m * m


def _tpu_vmem_bytes():
    """Physical per-core VMEM (128 MiB v5e/v6e, 64 MiB v7x); safe fallback."""
    try:
        info = pltpu.get_tpu_info()
        for attr in ("vmem_capacity_bytes", "vmem_bytes", "vmem_size_bytes"):
            v = getattr(info, attr, None)
            if v:
                return int(v)
    except Exception:
        pass
    return 64 * 1024 * 1024  # conservative: smallest (v7x per-TC) VMEM


def _vmem_limit(need_bytes, phys_bytes):
    # Size the scoped VMEM limit to the actual buffers with 25% headroom, but
    # leave ~15% of physical VMEM for compiler scratch / semaphores.
    usable = int(phys_bytes * 0.85)
    return int(min(max(int(need_bytes * 1.25), 16 * 1024 * 1024), usable))


# ---------------------------------------------------------------------------
# wrapper
# ---------------------------------------------------------------------------
def unfolding_forward(adj, x, *, alp=0.5, prop_step=5, kernel="DAD", force_tiled=False):
    """adj: (N, N) dense adjacency, adj[dst, src] in {0,1}; x: (N, F) features."""
    N, F = x.shape
    assert adj.shape == (N, N)
    adj = adj.astype(jnp.float32)
    x = x.astype(jnp.float32)
    alp = float(alp)
    prop_step = int(prop_step)
    if prop_step <= 0:
        return x

    # g.in_degrees().float().clamp(min=1)
    deg = jnp.maximum(jnp.sum(adj, axis=1), 1.0)          # (N,)
    dinv_sqrt = 1.0 / jnp.sqrt(deg)

    # Row / column scales so that A_hat = diag(r) A diag(c) covers all kernels:
    #   DAD: D^{-1/2} A D^{-1/2}    AD: A D^{-1}    DA: D^{-1} A
    if kernel == "DAD":
        r, c = dinv_sqrt, dinv_sqrt
    elif kernel == "AD":
        r, c = jnp.ones_like(deg), dinv_sqrt * dinv_sqrt
    elif kernel == "DA":
        r, c = dinv_sqrt * dinv_sqrt, jnp.ones_like(deg)
    else:
        raise ValueError(f"unknown kernel {kernel!r}")

    # Fold the degree normalization into A exactly ONCE, wrapper-side.
    a_hat = adj * r[:, None] * c[None, :]                  # f32 (N, N)

    vmem_phys = _tpu_vmem_bytes()
    fused_budget = int(vmem_phys * 0.70)

    # Fused-path sizing (padded to lane/MXU-friendly multiples of 128).
    Np, Fp = _round_up(N, 128), _round_up(F, 128)
    a_bytes = Np * Np * 2                                  # bf16 A_hat
    act_bytes = Np * Fp * 4                                # one f32 activation plane
    split_ok = (Fp % 256 == 0)                             # two 128-multiple halves
    need_split = 2 * a_bytes + 5 * act_bytes               # A double-buffered under grid
    need_plain = a_bytes + 5 * act_bytes                   # grid-less: single-buffer A

    if force_tiled:
        path = "tiled"
    elif split_ok and need_split <= fused_budget:
        path = "fused_split"
    elif need_plain <= fused_budget:
        path = "fused"
    else:
        path = "tiled"

    if path in ("fused", "fused_split"):
        a_pad = jnp.pad(a_hat, ((0, Np - N), (0, Np - N))).astype(jnp.bfloat16)
        x_pad = jnp.pad(x, ((0, Np - N), (0, Fp - F)))
        fused = functools.partial(_unfolding_fused_kernel, alp=alp, prop_step=prop_step)

        if path == "fused_split":
            # 2-wide "parallel" feature-column grid: on v7x each TensorCore runs
            # the full recurrence on half the columns with its own A_hat copy.
            half = Fp // 2
            out_pad = pl.pallas_call(
                fused,
                out_shape=jax.ShapeDtypeStruct((Np, Fp), jnp.float32),
                grid_spec=pltpu.PrefetchScalarGridSpec(
                    num_scalar_prefetch=0,
                    grid=(2,),
                    in_specs=[
                        pl.BlockSpec((Np, Np), lambda j: (0, 0)),     # A_hat (invariant)
                        pl.BlockSpec((Np, half), lambda j: (0, j)),   # X columns
                    ],
                    out_specs=pl.BlockSpec((Np, half), lambda j: (0, j)),
                ),
                compiler_params=pltpu.CompilerParams(
                    dimension_semantics=("parallel",),
                    vmem_limit_bytes=_vmem_limit(need_split, vmem_phys)),
            )(a_pad, x_pad)
        else:
            # Grid-less call: no pipeline, A_hat single-buffered in VMEM.
            out_pad = pl.pallas_call(
                fused,
                out_shape=jax.ShapeDtypeStruct((Np, Fp), jnp.float32),
                compiler_params=pltpu.CompilerParams(
                    vmem_limit_bytes=_vmem_limit(need_plain, vmem_phys)),
            )(a_pad, x_pad)
        return out_pad[:N, :F]

    # ---------------- tiled path: one pallas_call per prop step ----------------
    # Large tiles: tm=tk=512 (256-multiples fill the v6e/v7x 256-wide MXU and
    # amortize the ~0.35 us per-grid-step overhead); tn = Fp whenever it fits so
    # each A row-panel is streamed from HBM exactly once per prop step.
    Np_t = _round_up(N, 512)
    Fp_t = _round_up(F, 128)
    tm = 512
    tk = 512
    if Fp_t <= 512:
        tn = Fp_t
    elif Fp_t % 512 == 0:
        tn = 512
    elif Fp_t % 256 == 0:
        tn = 256
    else:
        tn = 128

    a_pad = jnp.pad(a_hat, ((0, Np_t - N), (0, Np_t - N))).astype(jnp.bfloat16)
    x_pad = jnp.pad(x, ((0, Np_t - N), (0, Fp_t - F)))

    grid = (Np_t // tm, Fp_t // tn, Np_t // tk)
    tile_bytes = (2 * tm * tk * 2      # A bf16, double-buffered
                  + 2 * tk * tn * 2    # Y bf16, double-buffered
                  + 2 * tm * tn * 4    # X f32, double-buffered
                  + 2 * tm * tn * 4    # out (worst case f32), double-buffered
                  + tm * tn * 4)       # f32 accumulator scratch

    def make_step(out_dtype):
        return pl.pallas_call(
            functools.partial(_prop_step_kernel, alp=alp),
            out_shape=jax.ShapeDtypeStruct((Np_t, Fp_t), out_dtype),
            grid_spec=pltpu.PrefetchScalarGridSpec(
                num_scalar_prefetch=0,
                grid=grid,
                in_specs=[
                    pl.BlockSpec((tm, tk), lambda i, j, k: (i, k)),   # A_hat (bf16)
                    pl.BlockSpec((tk, tn), lambda i, j, k: (k, j)),   # Y (bf16)
                    pl.BlockSpec((tm, tn), lambda i, j, k: (i, j)),   # X (f32)
                ],
                out_specs=pl.BlockSpec((tm, tn), lambda i, j, k: (i, j)),
                scratch_shapes=[pltpu.VMEM((tm, tn), jnp.float32)],
            ),
            compiler_params=pltpu.CompilerParams(
                dimension_semantics=("parallel", "parallel", "arbitrary"),
                vmem_limit_bytes=_vmem_limit(tile_bytes, vmem_phys),
            ),
        )

    step_last = make_step(jnp.float32)
    step_mid = make_step(jnp.bfloat16) if prop_step > 1 else None

    # Intermediate Y is carried in bf16 (halves Y HBM traffic and removes the
    # per-tile cast); the final step writes f32.  Residual mix uses f32 X.
    y = x_pad.astype(jnp.bfloat16)
    for s in range(prop_step):
        step = step_last if s == prop_step - 1 else step_mid
        y = step(a_pad, y, x_pad)
    return y[:N, :F]


# ---------------------------------------------------------------------------
# pure-JAX reference (mirrors the PyTorch module, f32 throughout)
# ---------------------------------------------------------------------------
def _reference(adj, x, *, alp=0.5, prop_step=5, kernel="DAD"):
    deg = jnp.maximum(jnp.sum(adj, axis=1), 1.0)
    dinv = jnp.power(deg, -0.5).reshape(-1, 1)
    Y = x
    for _ in range(prop_step):
        if kernel == "DAD":
            Z = (adj @ (Y * dinv)) * dinv
        elif kernel == "AD":
            Z = adj @ (Y * dinv * dinv)
        else:  # "DA"
            Z = (adj @ Y) * dinv * dinv
        Y = alp * Z + (1.0 - alp) * x
    return Y


if __name__ == "__main__":
    key = jax.random.PRNGKey(0)
    k1, k2, k3, k4, k5, k6 = jax.random.split(key, 6)

    # 1) Small graph, F=32 -> grid-less fused path (A_hat single-buffered in VMEM).
    N, F = 64, 32
    adj = (jax.random.uniform(k1, (N, N)) < 0.3).astype(jnp.float32)
    x = jax.random.normal(k2, (N, F), dtype=jnp.float32)
    out = jax.block_until_ready(
        unfolding_forward(adj, x, alp=0.5, prop_step=5, kernel="DAD"))
    ref = _reference(adj, x, alp=0.5, prop_step=5, kernel="DAD")
    assert out.shape == (N, F)
    assert jnp.allclose(out, ref, atol=2e-2, rtol=2e-2), "fused path mismatch"

    # 2) F divisible by 256 -> fused path with 2-wide "parallel" feature split
    #    (uses both TensorCores on v7x; harmless 2-step loop on v5e/v6e).
    N2, F2 = 128, 256
    adj2 = (jax.random.uniform(k3, (N2, N2)) < 0.1).astype(jnp.float32)
    x2 = jax.random.normal(k4, (N2, F2), dtype=jnp.float32)
    out2 = jax.block_until_ready(
        unfolding_forward(adj2, x2, alp=0.6, prop_step=4, kernel="AD"))
    ref2 = _reference(adj2, x2, alp=0.6, prop_step=4, kernel="AD")
    assert out2.shape == (N2, F2)
    assert jnp.allclose(out2, ref2, atol=2e-2, rtol=2e-2), "fused split path mismatch"

    # 3) Forced tiled path (streams A_hat in large bf16 tiles, bf16 Y carry,
    #    non-multiple N to exercise padding/slicing).
    N3, F3 = 200, 96
    adj3 = (jax.random.uniform(k5, (N3, N3)) < 0.05).astype(jnp.float32)
    x3 = jax.random.normal(k6, (N3, F3), dtype=jnp.float32)
    out3 = jax.block_until_ready(
        unfolding_forward(adj3, x3, alp=0.5, prop_step=3, kernel="DA",
                          force_tiled=True))
    ref3 = _reference(adj3, x3, alp=0.5, prop_step=3, kernel="DA")
    assert out3.shape == (N3, F3)
    assert jnp.allclose(out3, ref3, atol=2e-2, rtol=2e-2), "tiled path mismatch"

    print("KERNEL_OK")
</pallas_src>

<mosaic_0001>
module attributes {stable_mosaic.version = 11 : i64} {
  func.func @_unfolding_fused_kernel(%arg0: memref<128x128xbf16, #tpu.memory_space<vmem>>, %arg1: memref<128x128xf32, #tpu.memory_space<vmem>>, %arg2: memref<128x128xf32, #tpu.memory_space<vmem>>) attributes {dimension_semantics = [], scalar_prefetch = 0 : i64, scratch_operands = 0 : i64, tpu.core_type = #tpu.core_type<tc>} {
    %c0 = arith.constant 0 : index
    %c0_0 = arith.constant 0 : index
    %0 = vector.load %arg0[%c0, %c0_0] : memref<128x128xbf16, #tpu.memory_space<vmem>>, vector<128x128xbf16>
    %c0_1 = arith.constant 0 : index
    %c0_2 = arith.constant 0 : index
    %1 = vector.load %arg1[%c0_1, %c0_2] : memref<128x128xf32, #tpu.memory_space<vmem>>, vector<128x128xf32>
    %c0_i32 = arith.constant 0 : i32
    %2 = arith.truncf %1 : vector<128x128xf32> to vector<128x128xbf16>
    %cst = arith.constant dense<0.000000e+00> : vector<128x128xf32>
    %3 = tpu.matmul %0, %2, %cst {dimension_numbers = #tpu.dot_dimension_numbers<[1], [0], [0], [1], [0, 0, 1, 1], [], []>} : vector<128x128xbf16>, vector<128x128xbf16>, vector<128x128xf32> -> vector<128x128xf32>
    %cst_3 = arith.constant 5.000000e-01 : f32
    %4 = vector.broadcast %cst_3 : f32 to vector<128x128xf32>
    %5 = arith.mulf %4, %3 : vector<128x128xf32>
    %cst_4 = arith.constant 5.000000e-01 : f32
    %6 = vector.broadcast %cst_4 : f32 to vector<128x128xf32>
    %7 = arith.mulf %6, %1 : vector<128x128xf32>
    %8 = arith.addf %5, %7 : vector<128x128xf32>
    %c1_i32 = arith.constant 1 : i32
    %9 = arith.truncf %8 : vector<128x128xf32> to vector<128x128xbf16>
    %cst_5 = arith.constant dense<0.000000e+00> : vector<128x128xf32>
    %10 = tpu.matmul %0, %9, %cst_5 {dimension_numbers = #tpu.dot_dimension_numbers<[1], [0], [0], [1], [0, 0, 1, 1], [], []>} : vector<128x128xbf16>, vector<128x128xbf16>, vector<128x128xf32> -> vector<128x128xf32>
    %cst_6 = arith.constant 5.000000e-01 : f32
    %11 = vector.broadcast %cst_6 : f32 to vector<128x128xf32>
    %12 = arith.mulf %11, %10 : vector<128x128xf32>
    %cst_7 = arith.constant 5.000000e-01 : f32
    %13 = vector.broadcast %cst_7 : f32 to vector<128x128xf32>
    %14 = arith.mulf %13, %1 : vector<128x128xf32>
    %15 = arith.addf %12, %14 : vector<128x128xf32>
    %c2_i32 = arith.constant 2 : i32
    %16 = arith.truncf %15 : vector<128x128xf32> to vector<128x128xbf16>
    %cst_8 = arith.constant dense<0.000000e+00> : vector<128x128xf32>
    %17 = tpu.matmul %0, %16, %cst_8 {dimension_numbers = #tpu.dot_dimension_numbers<[1], [0], [0], [1], [0, 0, 1, 1], [], []>} : vector<128x128xbf16>, vector<128x128xbf16>, vector<128x128xf32> -> vector<128x128xf32>
    %cst_9 = arith.constant 5.000000e-01 : f32
    %18 = vector.broadcast %cst_9 : f32 to vector<128x128xf32>
    %19 = arith.mulf %18, %17 : vector<128x128xf32>
    %cst_10 = arith.constant 5.000000e-01 : f32
    %20 = vector.broadcast %cst_10 : f32 to vector<128x128xf32>
    %21 = arith.mulf %20, %1 : vector<128x128xf32>
    %22 = arith.addf %19, %21 : vector<128x128xf32>
    %c3_i32 = arith.constant 3 : i32
    %23 = arith.truncf %22 : vector<128x128xf32> to vector<128x128xbf16>
    %cst_11 = arith.constant dense<0.000000e+00> : vector<128x128xf32>
    %24 = tpu.matmul %0, %23, %cst_11 {dimension_numbers = #tpu.dot_dimension_numbers<[1], [0], [0], [1], [0, 0, 1, 1], [], []>} : vector<128x128xbf16>, vector<128x128xbf16>, vector<128x128xf32> -> vector<128x128xf32>
    %cst_12 = arith.constant 5.000000e-01 : f32
    %25 = vector.broadcast %cst_12 : f32 to vector<128x128xf32>
    %26 = arith.mulf %25, %24 : vector<128x128xf32>
    %cst_13 = arith.constant 5.000000e-01 : f32
    %27 = vector.broadcast %cst_13 : f32 to vector<128x128xf32>
    %28 = arith.mulf %27, %1 : vector<128x128xf32>
    %29 = arith.addf %26, %28 : vector<128x128xf32>
    %c4_i32 = arith.constant 4 : i32
    %30 = arith.truncf %29 : vector<128x128xf32> to vector<128x128xbf16>
    %cst_14 = arith.constant dense<0.000000e+00> : vector<128x128xf32>
    %31 = tpu.matmul %0, %30, %cst_14 {dimension_numbers = #tpu.dot_dimension_numbers<[1], [0], [0], [1], [0, 0, 1, 1], [], []>} : vector<128x128xbf16>, vector<128x128xbf16>, vector<128x128xf32> -> vector<128x128xf32>
    %cst_15 = arith.constant 5.000000e-01 : f32
    %32 = vector.broadcast %cst_15 : f32 to vector<128x128xf32>
    %33 = arith.mulf %32, %31 : vector<128x128xf32>
    %cst_16 = arith.constant 5.000000e-01 : f32
    %34 = vector.broadcast %cst_16 : f32 to vector<128x128xf32>
    %35 = arith.mulf %34, %1 : vector<128x128xf32>
    %36 = arith.addf %33, %35 : vector<128x128xf32>
    %c0_17 = arith.constant 0 : index
    %c0_18 = arith.constant 0 : index
    %37 = vector.load %arg2[%c0_17, %c0_18] : memref<128x128xf32, #tpu.memory_space<vmem>>, vector<128x128xf32>
    tpu.vector_store %arg2[%c0_17, %c0_18], %36 {strides = array<i32>} : memref<128x128xf32, #tpu.memory_space<vmem>>, vector<128x128xf32>,
    return
  }
}

</mosaic_0001>

<bundles_post_ra>
// kernel: tpu_custom_call.1
= control target key start
LH: loop header
LB: loop body
LE: loop exit
PB: predicated region body
PF: predicated region fallthrough
CT: control target
= control target key end

     0   :  { %7 = vsyncpa [#allocation3], 0  ;;  %s1485_s0 = inlined_call_operand.hbm [shape: bf16[128,128], index: 0, kind: input, shape index: {}]   ;;  %s1486_s1 = inlined_call_operand.hbm [shape: f32[128,128], index: 1, kind: input, shape index: {}]   ;;  %s1487_s2 = inlined_call_operand.hbm [shape: f32[128,128], index: 2, kind: output, shape index: {}]  }
   0x1   :  { %8 = vsyncpa [#allocation6], 0 }
   0x2   :  { %9 = vsyncpa [#allocation4], 0  ;;  %s1201_s9 = smov [#allocation2]  }
   0x3   :  { %s15_s10 = sshll.u32 %s1201_s9, 4  ;;  %s16_s10 = int_to_ptr.vmem [resolvable:$true] %s15_s10 }
   0x4   :  { %s1143_s11 = scalar_lea.vmem %s16_s10, 1024  ;;  %p1148_p1 = scmp.lt.s32.totalorder %s16_s10, %s16_s10 }
   0x5   :  { %p1144_p0 = scmp.ne.s32.totalorder %s16_s10, %s1143_s11  ;;  %p1149_p2 = scmp.lt.s32.totalorder %s1143_s11, %s1143_s11 }
   0x7   :  { %p1150_p3 = por %p1149_p2, %p1148_p1 }
   0x9   :  { %p1151_p4 = pnand %p1150_p3, %p1144_p0 }
   0xb   :  { %1154 = shalt.err (!%p1151_p4)
}
   0xc   :  { %s1202_s12 = smov 64   ;;  %s1203_s13 = smov 4  }
   0xd   :  { %21 = dma.hbm_to_vmem [thread:$0]  %s1485_s0, 1024, %s16_s10, [#allocation3], %s1202_s12, %s1202_s12, %s1203_s13  }
   0xe   :  { %s1204_s16 = smov [#allocation5]  }
   0xf   :  { %s27_s17 = sshll.u32 %s1204_s16, 4  ;;  %s28_s17 = int_to_ptr.vmem [resolvable:$true] %s27_s17 }
  0x10   :  { %s1163_s18 = scalar_lea.vmem %s28_s17, 2048  ;;  %p1168_p6 = scmp.lt.s32.totalorder %s28_s17, %s28_s17 }
  0x11   :  { %p1164_p5 = scmp.ne.s32.totalorder %s28_s17, %s1163_s18  ;;  %p1169_p7 = scmp.lt.s32.totalorder %s1163_s18, %s1163_s18 }
  0x13   :  { %p1170_p8 = por %p1169_p7, %p1168_p6 }
  0x15   :  { %p1171_p9 = pnand %p1170_p8, %p1164_p5 }
  0x17   :  { %1174 = shalt.err (!%p1171_p9)
}
  0x18   :  { %s1205_s19 = smov 128   ;;  %s1206_s20 = smov 8  }
  0x19   :  { %33 = dma.hbm_to_vmem [thread:$0]  %s1486_s1, 2048, %s28_s17, [#allocation6], %s1205_s19, %s1205_s19, %s1206_s20  }
  0x1a   :  { %1195 = dma.done.wait [#allocation3], 1024  }
  0x1b   :  { %1196 = vsyncadd [#allocation3], 4294966272 }
  0x1c   :  { %1197 = dma.done.wait [#allocation6], 2048  }
  0x1d   :  { %1198 = vsyncadd [#allocation6], 4294965248  ;;  %v1232_v0 = vld [vmem:[#allocation5 + $0x70] sm:$0xff]  ;;  %v1234_v1 = vld [vmem:[#allocation5 + $0x78] sm:$0xff]  ;;  %s1207_s0 = smov [#allocation7]  }
  0x1e   :  { %v1236_v2 = vld [vmem:[#allocation5 + $0x60] sm:$0xff]  ;;  %v80_v3 = vpack.c.bf16 %v1234_v1, %v1232_v0  ;;  %v1240_v4 = vld [vmem:[#allocation5 + $0x68] sm:$0xff]  ;;  %v1244_v6 = vld [vmem:[#allocation5 + $0x50] sm:$0xff]  ;;  %v1313_v46 = vmul.f32 0.5, %v1232_v0  ;;  %v1316_v47 = vmul.f32 0.5, %v1234_v1  ;;  %s843_s1 = sshll.u32 %s1207_s0, 4  ;;  %s844_s1 = int_to_ptr.vmem [resolvable:$true] %s843_s1 }
  0x1f   :  { %v79_v5 = vpack.c.bf16 %v1240_v4, %v1236_v2  ;;  %v1246_v7 = vld [vmem:[#allocation5 + $0x58] sm:$0xff]  ;;  %v1250_v9 = vld [vmem:[#allocation5 + $0x40] sm:$0xff]  ;;  %v1252_v10 = vld [vmem:[#allocation5 + $0x48] sm:$0xff]  ;;  %v1319_v50 = vmul.f32 0.5, %v1236_v2  ;;  %v1322_v51 = vmul.f32 0.5, %v1240_v4  ;;  %v1330_v60 = vmul.f32 0.5, %v1244_v6  ;;  %p1180_p11 = scmp.lt.s32.totalorder %s844_s1, %s844_s1 }
  0x20   :  { %944 = vmatprep.subr.bf16.mxu0 %v80_v3  ;;  %v78_v8 = vpack.c.bf16 %v1246_v7, %v1244_v6  ;;  %v1254_v11 = vld [vmem:[#allocation2] sm:$0xff]   ;;  %v77_v12 = vpack.c.bf16 %v1252_v10, %v1250_v9  ;;  %v1259_v13 = vld [vmem:[#allocation5 + $0x30] sm:$0xff]  ;;  %v1262_v14 = vld [vmem:[#allocation5 + $0x38] sm:$0xff]  ;;  %v1325_v54 = vmul.f32 0.5, %v1246_v7  ;;  %v1335_v1 = vmul.f32 0.5, %v1252_v10  ;;  %s1175_s23 = scalar_lea.vmem %s844_s1, 2048 }
  0x21   :  { %945 = vmatpush3.bf16.msra.mxu0 %v80_v3  ;;  %960 = vmatprep.mubr.bf16.mxu0 %v1254_v11  ;;  %v76_v15 = vpack.c.bf16 %v1262_v14, %v1259_v13  ;;  %v1266_v16 = vld [vmem:[#allocation5 + $0x20] sm:$0xff]  ;;  %v1268_v17 = vld [vmem:[#allocation5 + $0x28] sm:$0xff]  ;;  %v1272_v19 = vld [vmem:[#allocation5 + $0x10] sm:$0xff]  ;;  %p1176_p10 = scmp.ne.s32.totalorder %s844_s1, %s1175_s23  ;;  %p1181_p12 = scmp.lt.s32.totalorder %s1175_s23, %s1175_s23 }
  0x22   :  { %946 = vmatprep.subr.bf16.mxu0 %v79_v5  ;;  %992 = vmatprep.mubr.bf16.mxu1 %v1254_v11  ;;  %v75_v18 = vpack.c.bf16 %v1268_v17, %v1266_v16  ;;  %v1274_v20 = vld [vmem:[#allocation5 + $0x18] sm:$0xff]  ;;  %v1278_v22 = vld [vmem:[#allocation5] sm:$0xff]  ;;  %v1280_v23 = vld [vmem:[#allocation5 + $0x8] sm:$0xff] }
  0x23   :  { %v74_v21 = vpack.c.bf16 %v1274_v20, %v1272_v19  ;;  %v73_v24 = vpack.c.bf16 %v1280_v23, %v1278_v22  ;;  %v1284_v25 = vld [vmem:[#allocation2 + $0x8] sm:$0xff]   ;;  %v1286_v26 = vld [vmem:[#allocation2 + $0x10] sm:$0xff]   ;;  %v1290_v27 = vld [vmem:[#allocation2 + $0x18] sm:$0xff]   ;;  %p1182_p13 = por %p1181_p12, %p1180_p11 }
  0x24   :  { %v1292_v28 = vld [vmem:[#allocation2 + $0x20] sm:$0xff]   ;;  %v1296_v29 = vld [vmem:[#allocation2 + $0x28] sm:$0xff]   ;;  %v1298_v30 = vld [vmem:[#allocation2 + $0x30] sm:$0xff]  }
  0x25   :  { %947 = vmatpush3.bf16.msra.mxu0 %v79_v5  ;;  %v1302_v31 = vld [vmem:[#allocation2 + $0x38] sm:$0xff]   ;;  %v1339_v5 = vmul.f32 0.5, %v1250_v9  ;;  %v1351_v9 = vmul.f32 0.5, %v1268_v17  ;;  %p1183_p0 = pnand %p1182_p13, %p1176_p10 }
  0x26   :  { %948 = vmatprep.subr.bf16.mxu0 %v78_v8 }
  0x29   :  { %949 = vmatpush3.bf16.msra.mxu0 %v78_v8  ;;  %v1343_v8 = vmul.f32 0.5, %v1262_v14 }
  0x2a   :  { %950 = vmatprep.subr.bf16.mxu0 %v77_v12 }
  0x2d   :  { %951 = vmatpush3.bf16.msra.mxu0 %v77_v12 }
  0x2e   :  { %952 = vmatprep.subr.bf16.mxu0 %v76_v15 }
  0x31   :  { %953 = vmatpush3.bf16.msra.mxu0 %v76_v15 }
  0x32   :  { %954 = vmatprep.subr.bf16.mxu0 %v75_v18 }
  0x35   :  { %955 = vmatpush3.bf16.msra.mxu0 %v75_v18  ;;  %v1347_v18 = vmul.f32 0.5, %v1259_v13  ;;  %v1359_v13 = vmul.f32 0.5, %v1274_v20 }
  0x36   :  { %956 = vmatprep.subr.bf16.mxu0 %v74_v21 }
  0x39   :  { %957 = vmatpush3.bf16.msra.mxu0 %v74_v21 }
  0x3a   :  { %958 = vmatprep.subr.bf16.mxu0 %v73_v24 }
  0x3d   :  { %959 = vmatpush3.bf16.msra.mxu0 %v73_v24 }
  0x40   :  { %961 = vmatmul.mubr.bf16.vlgmr.msra.gmra.mxu0 %v1284_v25 }
  0x41   :  { %964 = vmatprep.mubr.bf16.mxu0 %v1286_v26 }
  0x48   :  { %965 = vmatmul.mubr.bf16.gmra.mxu0 %v1290_v27 }
  0x49   :  { %968 = vmatprep.mubr.bf16.mxu0 %v1292_v28 }
  0x50   :  { %969 = vmatmul.mubr.bf16.gmra.mxu0 %v1296_v29 }
  0x51   :  { %972 = vmatprep.mubr.bf16.mxu0 %v1298_v30 }
  0x58   :  { %973 = vmatmul.mubr.bf16.gmra.mxu0 %v1302_v31 }
  0x59   :  { %1024 = vmatprep.mubr.bf16.mxu0 %v1254_v11 }
 0x100   :  { %v1306_v32 = vpop.f32.mrf.mxu0 }
 0x102   :  { %v1308_v33 = vpop.f32.mrf.mxu0 }
 0x104   :  { %v963_v34 = vpop.f32.mrf.mxu0 }
 0x106   :  { %v1310_v35 = vpop.f32.mrf.mxu0 }
 0x107   :  { %v227_v20 = vmul.f32 0.5, %v1310_v35 }
 0x108   :  { %v966_v36 = vpop.f32.mrf.mxu0 }
 0x109   :  { %v232_v21 = vmul.f32 0.5, %v966_v36  ;;  %v229_v36 = vmul.f32 0.5, %v963_v34 }
 0x10a   :  { %v179_v37 = vpop.f32.mrf.mxu0 }
 0x10c   :  { %v967_v38 = vpop.f32.mrf.mxu0 }
 0x10d   :  { %v233_v12 = vmul.f32 0.5, %v967_v38  ;;  %v1355_v38 = vmul.f32 0.5, %v1266_v16 }
 0x10e   :  { %v182_v39 = vpop.f32.mrf.mxu0 }
 0x110   :  { %v970_v40 = vpop.f32.mrf.mxu0 }
 0x111   :  { %v236_v61 = vmul.f32 0.5, %v970_v40  ;;  %v265_v40 = vadd.f32 %v1343_v8, %v233_v12 }
 0x112   :  { %v195_v41 = vpop.f32.mrf.mxu0 }
 0x113   :  { %v268_v6 = vadd.f32 %v1330_v60, %v236_v61  ;;  %v234_v7 = vmul.f32 0.5, %v195_v41  ;;  %v231_v41 = vmul.f32 0.5, %v182_v39  ;;  %v228_v39 = vmul.f32 0.5, %v1306_v32 }
 0x114   :  { %v971_v42 = vpop.f32.mrf.mxu0 }
 0x115   :  { %v237_v56 = vmul.f32 0.5, %v971_v42  ;;  %v266_v24 = vadd.f32 %v1339_v5, %v234_v7  ;;  %v264_v42 = vadd.f32 %v1347_v18, %v232_v21 }
 0x116   :  { %v198_v43 = vpop.f32.mrf.mxu0 }
 0x117   :  { %v269_v2 = vadd.f32 %v1325_v54, %v237_v56  ;;  %v235_v3 = vmul.f32 0.5, %v198_v43  ;;  %v230_v43 = vmul.f32 0.5, %v179_v37  ;;  %v277_v17 = vpack.c.bf16 %v265_v40, %v264_v42 }
 0x118   :  { %v974_v44 = vpop.f32.mrf.mxu0  ;;  %v261_v37 = vadd.f32 %v1359_v13, %v229_v36 }
 0x119   :  { %v240_v48 = vmul.f32 0.5, %v974_v44  ;;  %v267_v10 = vadd.f32 %v1335_v1, %v235_v3  ;;  %v279_v15 = vpack.c.bf16 %v269_v2, %v268_v6  ;;  %v263_v44 = vadd.f32 %v1351_v9, %v231_v41 }
 0x11a   :  { %v211_v45 = vpop.f32.mrf.mxu0  ;;  %v262_v16 = vadd.f32 %v1355_v38, %v230_v43 }
 0x11b   :  { %v238_v52 = vmul.f32 0.5, %v211_v45  ;;  %v272_v57 = vadd.f32 %v1313_v46, %v240_v48  ;;  %v278_v14 = vpack.c.bf16 %v267_v10, %v266_v24  ;;  %v1363_v45 = vmul.f32 0.5, %v1272_v19 }
 0x11c   :  { %v975_v49 = vpop.f32.mrf.mxu0  ;;  %v1368_v48 = vmul.f32 0.5, %v1280_v23  ;;  %v276_v34 = vpack.c.bf16 %v263_v44, %v262_v16 }
 0x11d   :  { %v241_v53 = vmul.f32 0.5, %v975_v49  ;;  %v270_v62 = vadd.f32 %v1319_v50, %v238_v52  ;;  %v1373_v49 = vmul.f32 0.5, %v1278_v22  ;;  %v260_v19 = vadd.f32 %v1363_v45, %v228_v39 }
 0x11e   :  { %v214_v55 = vpop.f32.mrf.mxu0  ;;  %v226_v52 = vmul.f32 0.5, %v1308_v33  ;;  %v259_v32 = vadd.f32 %v1368_v48, %v227_v20 }
 0x11f   :  { %v273_v58 = vadd.f32 %v1316_v47, %v241_v53  ;;  %v239_v59 = vmul.f32 0.5, %v214_v55  ;;  %v275_v53 = vpack.c.bf16 %v261_v37, %v260_v19 }
 0x120   :  { %v258_v23 = vadd.f32 %v1373_v49, %v226_v52 }
 0x121   :  { %v271_v63 = vadd.f32 %v1322_v51, %v239_v59  ;;  %v281_v0 = vpack.c.bf16 %v273_v58, %v272_v57 }
 0x122   :  { %v274_v55 = vpack.c.bf16 %v259_v32, %v258_v23 }
 0x123   :  { %976 = vmatprep.subr.bf16.mxu1 %v281_v0  ;;  %v280_v4 = vpack.c.bf16 %v271_v63, %v270_v62 }
 0x124   :  { %977 = vmatpush3.bf16.msra.mxu1 %v281_v0 }
 0x125   :  { %978 = vmatprep.subr.bf16.mxu1 %v280_v4 }
 0x128   :  { %979 = vmatpush3.bf16.msra.mxu1 %v280_v4 }
 0x129   :  { %980 = vmatprep.subr.bf16.mxu1 %v279_v15 }
 0x12c   :  { %981 = vmatpush3.bf16.msra.mxu1 %v279_v15 }
 0x12d   :  { %982 = vmatprep.subr.bf16.mxu1 %v278_v14 }
 0x130   :  { %983 = vmatpush3.bf16.msra.mxu1 %v278_v14 }
 0x131   :  { %984 = vmatprep.subr.bf16.mxu1 %v277_v17 }
 0x134   :  { %985 = vmatpush3.bf16.msra.mxu1 %v277_v17 }
 0x135   :  { %986 = vmatprep.subr.bf16.mxu1 %v276_v34 }
 0x138   :  { %987 = vmatpush3.bf16.msra.mxu1 %v276_v34 }
 0x139   :  { %988 = vmatprep.subr.bf16.mxu1 %v275_v53 }
 0x13c   :  { %989 = vmatpush3.bf16.msra.mxu1 %v275_v53 }
 0x13d   :  { %990 = vmatprep.subr.bf16.mxu1 %v274_v55 }
 0x140   :  { %991 = vmatpush3.bf16.msra.mxu1 %v274_v55 }
 0x143   :  { %993 = vmatmul.mubr.bf16.vlgmr.msra.gmra.mxu1 %v1284_v25 }
 0x144   :  { %996 = vmatprep.mubr.bf16.mxu1 %v1286_v26 }
 0x14b   :  { %997 = vmatmul.mubr.bf16.gmra.mxu1 %v1290_v27 }
 0x14c   :  { %1000 = vmatprep.mubr.bf16.mxu1 %v1292_v28 }
 0x153   :  { %1001 = vmatmul.mubr.bf16.gmra.mxu1 %v1296_v29 }
 0x154   :  { %1004 = vmatprep.mubr.bf16.mxu1 %v1298_v30 }
 0x15b   :  { %1005 = vmatmul.mubr.bf16.gmra.mxu1 %v1302_v31 }
 0x15c   :  { %1056 = vmatprep.mubr.bf16.mxu1 %v1254_v11 }
 0x203   :  { %v994_v22 = vpop.f32.mrf.mxu1 }
 0x205   :  { %v316_v33 = vpop.f32.mrf.mxu1 }
 0x207   :  { %v995_v35 = vpop.f32.mrf.mxu1 }
 0x209   :  { %v319_v56 = vpop.f32.mrf.mxu1 }
 0x20b   :  { %v998_v57 = vpop.f32.mrf.mxu1 }
 0x20c   :  { %v385_v52 = vmul.f32 0.5, %v998_v57 }
 0x20d   :  { %v332_v58 = vpop.f32.mrf.mxu1 }
 0x20f   :  { %v999_v59 = vpop.f32.mrf.mxu1 }
 0x210   :  { %v386_v20 = vmul.f32 0.5, %v999_v59 }
 0x211   :  { %v335_v61 = vpop.f32.mrf.mxu1 }
 0x212   :  { %v402_v53 = vadd.f32 %v386_v20, %v1343_v8  ;;  %v384_v23 = vmul.f32 0.5, %v335_v61 }
 0x213   :  { %v1002_v62 = vpop.f32.mrf.mxu1 }
 0x214   :  { %v389_v14 = vmul.f32 0.5, %v1002_v62  ;;  %v401_v62 = vadd.f32 %v385_v52, %v1347_v18  ;;  %v400_v59 = vadd.f32 %v384_v23, %v1351_v9 }
 0x215   :  { %v348_v63 = vpop.f32.mrf.mxu1 }
 0x216   :  { %v405_v16 = vadd.f32 %v389_v14, %v1330_v60  ;;  %v387_v37 = vmul.f32 0.5, %v348_v63  ;;  %v382_v63 = vmul.f32 0.5, %v995_v35 }
 0x217   :  { %v1003_v0 = vpop.f32.mrf.mxu1 }
 0x218   :  { %v390_v21 = vmul.f32 0.5, %v1003_v0  ;;  %v403_v32 = vadd.f32 %v387_v37, %v1339_v5  ;;  %v383_v0 = vmul.f32 0.5, %v332_v58 }
 0x219   :  { %v351_v2 = vpop.f32.mrf.mxu1 }
 0x21a   :  { %v406_v44 = vadd.f32 %v390_v21, %v1325_v54  ;;  %v388_v17 = vmul.f32 0.5, %v351_v2  ;;  %v414_v2 = vpack.c.bf16 %v402_v53, %v401_v62  ;;  %v399_v57 = vadd.f32 %v383_v0, %v1355_v38 }
 0x21b   :  { %v1006_v3 = vpop.f32.mrf.mxu1 }
 0x21c   :  { %v393_v6 = vmul.f32 0.5, %v1006_v3  ;;  %v404_v34 = vadd.f32 %v388_v17, %v1335_v1  ;;  %v416_v19 = vpack.c.bf16 %v406_v44, %v405_v16  ;;  %v381_v3 = vmul.f32 0.5, %v994_v22 }
 0x21d   :  { %v364_v4 = vpop.f32.mrf.mxu1 }
 0x21e   :  { %v391_v12 = vmul.f32 0.5, %v364_v4  ;;  %v409_v24 = vadd.f32 %v393_v6, %v1313_v46  ;;  %v415_v55 = vpack.c.bf16 %v404_v34, %v403_v32  ;;  %v398_v4 = vadd.f32 %v382_v63, %v1359_v13 }
 0x21f   :  { %v1007_v7 = vpop.f32.mrf.mxu1  ;;  %v380_v6 = vmul.f32 0.5, %v319_v56  ;;  %v397_v61 = vadd.f32 %v381_v3, %v1363_v45 }
 0x220   :  { %v394_v10 = vmul.f32 0.5, %v1007_v7  ;;  %v407_v42 = vadd.f32 %v391_v12, %v1319_v50  ;;  %v413_v7 = vpack.c.bf16 %v400_v59, %v399_v57  ;;  %v379_v12 = vmul.f32 0.5, %v316_v33 }
 0x221   :  { %v367_v15 = vpop.f32.mrf.mxu1  ;;  %v396_v58 = vadd.f32 %v380_v6, %v1368_v48  ;;  %v412_v35 = vpack.c.bf16 %v398_v4, %v397_v61 }
 0x222   :  { %v410_v40 = vadd.f32 %v394_v10, %v1316_v47  ;;  %v392_v41 = vmul.f32 0.5, %v367_v15  ;;  %v395_v10 = vadd.f32 %v379_v12, %v1373_v49 }
 0x224   :  { %v408_v43 = vadd.f32 %v392_v41, %v1322_v51  ;;  %v418_v36 = vpack.c.bf16 %v410_v40, %v409_v24  ;;  %v411_v22 = vpack.c.bf16 %v396_v58, %v395_v10 }
 0x226   :  { %1008 = vmatprep.subr.bf16.mxu0 %v418_v36  ;;  %v417_v39 = vpack.c.bf16 %v408_v43, %v407_v42 }
 0x227   :  { %1009 = vmatpush3.bf16.msra.mxu0 %v418_v36 }
 0x228   :  { %1010 = vmatprep.subr.bf16.mxu0 %v417_v39 }
 0x22b   :  { %1011 = vmatpush3.bf16.msra.mxu0 %v417_v39 }
 0x22c   :  { %1012 = vmatprep.subr.bf16.mxu0 %v416_v19 }
 0x22f   :  { %1013 = vmatpush3.bf16.msra.mxu0 %v416_v19 }
 0x230   :  { %1014 = vmatprep.subr.bf16.mxu0 %v415_v55 }
 0x233   :  { %1015 = vmatpush3.bf16.msra.mxu0 %v415_v55 }
 0x234   :  { %1016 = vmatprep.subr.bf16.mxu0 %v414_v2 }
 0x237   :  { %1017 = vmatpush3.bf16.msra.mxu0 %v414_v2 }
 0x238   :  { %1018 = vmatprep.subr.bf16.mxu0 %v413_v7 }
 0x23b   :  { %1019 = vmatpush3.bf16.msra.mxu0 %v413_v7 }
 0x23c   :  { %1020 = vmatprep.subr.bf16.mxu0 %v412_v35 }
 0x23f   :  { %1021 = vmatpush3.bf16.msra.mxu0 %v412_v35 }
 0x240   :  { %1022 = vmatprep.subr.bf16.mxu0 %v411_v22 }
 0x243   :  { %1023 = vmatpush3.bf16.msra.mxu0 %v411_v22 }
 0x246   :  { %1025 = vmatmul.mubr.bf16.vlgmr.msra.gmra.mxu0 %v1284_v25 }
 0x247   :  { %1028 = vmatprep.mubr.bf16.mxu0 %v1286_v26 }
 0x24e   :  { %1029 = vmatmul.mubr.bf16.gmra.mxu0 %v1290_v27 }
 0x24f   :  { %1032 = vmatprep.mubr.bf16.mxu0 %v1292_v28 }
 0x256   :  { %1033 = vmatmul.mubr.bf16.gmra.mxu0 %v1296_v29 }
 0x257   :  { %1036 = vmatprep.mubr.bf16.mxu0 %v1298_v30 }
 0x25e   :  { %1037 = vmatmul.mubr.bf16.gmra.mxu0 %v1302_v31 }
 0x25f   :  { %1088 = vmatprep.mubr.bf16.mxu0 %v1254_v11 }
 0x306   :  { %v1026_v33 = vpop.f32.mrf.mxu0 }
 0x308   :  { %v453_v56 = vpop.f32.mrf.mxu0 }
 0x30a   :  { %v1027_v15 = vpop.f32.mrf.mxu0 }
 0x30c   :  { %v456_v21 = vpop.f32.mrf.mxu0 }
 0x30e   :  { %v1030_v24 = vpop.f32.mrf.mxu0 }
 0x30f   :  { %v522_v61 = vmul.f32 0.5, %v1030_v24 }
 0x310   :  { %v469_v40 = vpop.f32.mrf.mxu0 }
 0x311   :  { %v538_v22 = vadd.f32 %v522_v61, %v1347_v18 }
 0x312   :  { %v1031_v41 = vpop.f32.mrf.mxu0 }
 0x313   :  { %v523_v4 = vmul.f32 0.5, %v1031_v41 }
 0x314   :  { %v472_v14 = vpop.f32.mrf.mxu0 }
 0x315   :  { %v539_v58 = vadd.f32 %v523_v4, %v1343_v8  ;;  %v521_v35 = vmul.f32 0.5, %v472_v14 }
 0x316   :  { %v1034_v42 = vpop.f32.mrf.mxu0 }
 0x317   :  { %v526_v23 = vmul.f32 0.5, %v1034_v42  ;;  %v520_v42 = vmul.f32 0.5, %v469_v40  ;;  %v537_v41 = vadd.f32 %v521_v35, %v1351_v9 }
 0x318   :  { %v485_v43 = vpop.f32.mrf.mxu0 }
 0x319   :  { %v542_v3 = vadd.f32 %v526_v23, %v1330_v60  ;;  %v524_v57 = vmul.f32 0.5, %v485_v43  ;;  %v519_v43 = vmul.f32 0.5, %v1027_v15  ;;  %v536_v24 = vadd.f32 %v520_v42, %v1355_v38 }
 0x31a   :  { %v1035_v36 = vpop.f32.mrf.mxu0 }
 0x31b   :  { %v527_v11 = vmul.f32 0.5, %v1035_v36  ;;  %v540_v12 = vadd.f32 %v524_v57, %v1339_v5  ;;  %v551_v36 = vpack.c.bf16 %v539_v58, %v538_v22 }
 0x31c   :  { %v488_v44 = vpop.f32.mrf.mxu0 }
 0x31d   :  { %v543_v63 = vadd.f32 %v527_v11, %v1325_v54  ;;  %v525_v59 = vmul.f32 0.5, %v488_v44  ;;  %v518_v44 = vmul.f32 0.5, %v1026_v33 }
 0x31e   :  { %v1038_v17 = vpop.f32.mrf.mxu0 }
 0x31f   :  { %v530_v16 = vmul.f32 0.5, %v1038_v17  ;;  %v541_v6 = vadd.f32 %v525_v59, %v1335_v1  ;;  %v553_v7 = vpack.c.bf16 %v543_v63, %v542_v3  ;;  %v535_v17 = vadd.f32 %v519_v43, %v1359_v13 }
 0x320   :  { %v501_v39 = vpop.f32.mrf.mxu0  ;;  %v534_v14 = vadd.f32 %v518_v44, %v1363_v45 }
 0x321   :  { %v528_v20 = vmul.f32 0.5, %v501_v39  ;;  %v546_v52 = vadd.f32 %v530_v16, %v1313_v46  ;;  %v552_v10 = vpack.c.bf16 %v541_v6, %v540_v12  ;;  %v517_v39 = vmul.f32 0.5, %v456_v21 }
 0x322   :  { %v1039_v37 = vpop.f32.mrf.mxu0  ;;  %v550_v16 = vpack.c.bf16 %v537_v41, %v536_v24  ;;  %v549_v15 = vpack.c.bf16 %v535_v17, %v534_v14 }
 0x323   :  { %v531_v34 = vmul.f32 0.5, %v1039_v37  ;;  %v544_v55 = vadd.f32 %v528_v20, %v1319_v50  ;;  %v516_v37 = vmul.f32 0.5, %v453_v56  ;;  %v533_v40 = vadd.f32 %v517_v39, %v1368_v48 }
 0x324   :  { %v504_v19 = vpop.f32.mrf.mxu0 }
 0x325   :  { %v547_v32 = vadd.f32 %v531_v34, %v1316_v47  ;;  %v529_v53 = vmul.f32 0.5, %v504_v19  ;;  %v532_v20 = vadd.f32 %v516_v37, %v1373_v49 }
 0x327   :  { %v545_v62 = vadd.f32 %v529_v53, %v1322_v51  ;;  %v555_v0 = vpack.c.bf16 %v547_v32, %v546_v52  ;;  %v548_v33 = vpack.c.bf16 %v533_v40, %v532_v20 }
 0x329   :  { %1040 = vmatprep.subr.bf16.mxu1 %v555_v0  ;;  %v554_v2 = vpack.c.bf16 %v545_v62, %v544_v55 }
 0x32a   :  { %1041 = vmatpush3.bf16.msra.mxu1 %v555_v0 }
 0x32b   :  { %1042 = vmatprep.subr.bf16.mxu1 %v554_v2 }
 0x32e   :  { %1043 = vmatpush3.bf16.msra.mxu1 %v554_v2 }
 0x32f   :  { %1044 = vmatprep.subr.bf16.mxu1 %v553_v7 }
 0x332   :  { %1045 = vmatpush3.bf16.msra.mxu1 %v553_v7 }
 0x333   :  { %1046 = vmatprep.subr.bf16.mxu1 %v552_v10 }
 0x336   :  { %1047 = vmatpush3.bf16.msra.mxu1 %v552_v10 }
 0x337   :  { %1048 = vmatprep.subr.bf16.mxu1 %v551_v36 }
 0x33a   :  { %1049 = vmatpush3.bf16.msra.mxu1 %v551_v36 }
 0x33b   :  { %1050 = vmatprep.subr.bf16.mxu1 %v550_v16 }
 0x33e   :  { %1051 = vmatpush3.bf16.msra.mxu1 %v550_v16 }
 0x33f   :  { %1052 = vmatprep.subr.bf16.mxu1 %v549_v15 }
 0x342   :  { %1053 = vmatpush3.bf16.msra.mxu1 %v549_v15 }
 0x343   :  { %1054 = vmatprep.subr.bf16.mxu1 %v548_v33 }
 0x346   :  { %1055 = vmatpush3.bf16.msra.mxu1 %v548_v33 }
 0x349   :  { %1057 = vmatmul.mubr.bf16.vlgmr.msra.gmra.mxu1 %v1284_v25 }
 0x34a   :  { %1060 = vmatprep.mubr.bf16.mxu1 %v1286_v26 }
 0x351   :  { %1061 = vmatmul.mubr.bf16.gmra.mxu1 %v1290_v27 }
 0x352   :  { %1064 = vmatprep.mubr.bf16.mxu1 %v1292_v28 }
 0x359   :  { %1065 = vmatmul.mubr.bf16.gmra.mxu1 %v1296_v29 }
 0x35a   :  { %1068 = vmatprep.mubr.bf16.mxu1 %v1298_v30 }
 0x361   :  { %1069 = vmatmul.mubr.bf16.gmra.mxu1 %v1302_v31 }
 0x362   :  { %1096 = vmatprep.mubr.bf16.mxu1 %v1292_v28 }
 0x409   :  { %v1058_v56 = vpop.f32.mrf.mxu1 }
 0x40b   :  { %v1435_v21 = vpop.f32.mrf.mxu1 }
 0x40d   :  { %v1059_v34 = vpop.f32.mrf.mxu1 }
 0x40f   :  { %v1437_v19 = vpop.f32.mrf.mxu1 }
 0x411   :  { %v1062_v11 = vpop.f32.mrf.mxu1 }
 0x412   :  { %v659_v16 = vmul.f32 0.5, %v1062_v11  ;;  %v655_v11 = vmul.f32 0.5, %v1058_v56 }
 0x413   :  { %v606_v52 = vpop.f32.mrf.mxu1 }
 0x414   :  { %v675_v20 = vadd.f32 %v659_v16, %v1347_v18  ;;  %v657_v33 = vmul.f32 0.5, %v606_v52  ;;  %v671_v52 = vadd.f32 %v655_v11, %v1363_v45 }
 0x415   :  { %v1063_v32 = vpop.f32.mrf.mxu1 }
 0x416   :  { %v660_v24 = vmul.f32 0.5, %v1063_v32  ;;  %v656_v32 = vmul.f32 0.5, %v1059_v34  ;;  %v653_v34 = vmul.f32 0.5, %v1435_v21 }
 0x417   :  { %v609_v53 = vpop.f32.mrf.mxu1 }
 0x418   :  { %v676_v37 = vadd.f32 %v660_v24, %v1343_v8  ;;  %v658_v40 = vmul.f32 0.5, %v609_v53  ;;  %v672_v53 = vadd.f32 %v656_v32, %v1359_v13 }
 0x419   :  { %v1066_v23 = vpop.f32.mrf.mxu1 }
 0x41a   :  { %v663_v58 = vmul.f32 0.5, %v1066_v23  ;;  %v688_v23 = vpack.c.bf16 %v676_v37, %v675_v20 }
 0x41b   :  { %v622_v55 = vpop.f32.mrf.mxu1 }
 0x41c   :  { %v679_v36 = vadd.f32 %v663_v58, %v1330_v60  ;;  %v661_v44 = vmul.f32 0.5, %v622_v55  ;;  %v674_v55 = vadd.f32 %v658_v40, %v1351_v9 }
 0x41d   :  { %v1067_v62 = vpop.f32.mrf.mxu1 }
 0x41e   :  { %v664_v6 = vmul.f32 0.5, %v1067_v62  ;;  %v677_v14 = vadd.f32 %v661_v44, %v1339_v5  ;;  %v673_v62 = vadd.f32 %v657_v33, %v1355_v38 }
 0x41f   :  { %v625_v0 = vpop.f32.mrf.mxu1 }
 0x420   :  { %v680_v42 = vadd.f32 %v664_v6, %v1325_v54  ;;  %v662_v43 = vmul.f32 0.5, %v625_v0  ;;  %v654_v0 = vmul.f32 0.5, %v1437_v19 }
 0x421   :  { %v1070_v63 = vpop.f32.mrf.mxu1 }
 0x422   :  { %v667_v2 = vmul.f32 0.5, %v1070_v63  ;;  %v690_v17 = vpack.c.bf16 %v680_v42, %v679_v36  ;;  %v678_v39 = vadd.f32 %v662_v43, %v1335_v1  ;;  %v687_v63 = vpack.c.bf16 %v674_v55, %v673_v62 }
 0x423   :  { %v638_v59 = vpop.f32.mrf.mxu1  ;;  %v670_v56 = vadd.f32 %v654_v0, %v1368_v48 }
 0x424   :  { %v665_v57 = vmul.f32 0.5, %v638_v59  ;;  %v683_v7 = vadd.f32 %v667_v2, %v1313_v46  ;;  %v689_v15 = vpack.c.bf16 %v678_v39, %v677_v14  ;;  %v686_v59 = vpack.c.bf16 %v672_v53, %v671_v52 }
 0x425   :  { %v1071_v3 = vpop.f32.mrf.mxu1  ;;  %v669_v2 = vadd.f32 %v653_v34, %v1373_v49 }
 0x426   :  { %v668_v28 = vmul.f32 0.5, %v1071_v3  ;;  %v681_v35 = vadd.f32 %v665_v57, %v1319_v50 }
 0x427   :  { %v641_v4 = vpop.f32.mrf.mxu1  ;;  %v685_v3 = vpack.c.bf16 %v670_v56, %v669_v2 }
 0x428   :  { %v684_v61 = vadd.f32 %v668_v28, %v1316_v47  ;;  %v666_v12 = vmul.f32 0.5, %v641_v4 }
 0x42a   :  { %v692_v10 = vpack.c.bf16 %v684_v61, %v683_v7  ;;  %v682_v22 = vadd.f32 %v666_v12, %v1322_v51 }
 0x42c   :  { %v691_v41 = vpack.c.bf16 %v682_v22, %v681_v35  ;;  %1072 = vmatprep.subr.bf16.mxu0 %v692_v10  ;;  %1104 = vmatprep.subr.bf16.mxu1 %v692_v10 }
 0x42d   :  { %1073 = vmatpush3.bf16.msra.mxu0 %v692_v10  ;;  %1112 = vmatpush3.bf16.msra.mxu1 %v692_v10 }
 0x42e   :  { %1074 = vmatprep.subr.bf16.mxu0 %v691_v41  ;;  %1105 = vmatprep.subr.bf16.mxu1 %v691_v41 }
 0x431   :  { %1075 = vmatpush3.bf16.msra.mxu0 %v691_v41  ;;  %1113 = vmatpush3.bf16.msra.mxu1 %v691_v41 }
 0x432   :  { %1076 = vmatprep.subr.bf16.mxu0 %v690_v17  ;;  %1106 = vmatprep.subr.bf16.mxu1 %v690_v17 }
 0x435   :  { %1077 = vmatpush3.bf16.msra.mxu0 %v690_v17  ;;  %1114 = vmatpush3.bf16.msra.mxu1 %v690_v17 }
 0x436   :  { %1078 = vmatprep.subr.bf16.mxu0 %v689_v15  ;;  %1107 = vmatprep.subr.bf16.mxu1 %v689_v15 }
 0x439   :  { %1079 = vmatpush3.bf16.msra.mxu0 %v689_v15  ;;  %1115 = vmatpush3.bf16.msra.mxu1 %v689_v15 }
 0x43a   :  { %1080 = vmatprep.subr.bf16.mxu0 %v688_v23  ;;  %1108 = vmatprep.subr.bf16.mxu1 %v688_v23 }
 0x43d   :  { %1081 = vmatpush3.bf16.msra.mxu0 %v688_v23  ;;  %1116 = vmatpush3.bf16.msra.mxu1 %v688_v23 }
 0x43e   :  { %1082 = vmatprep.subr.bf16.mxu0 %v687_v63  ;;  %1109 = vmatprep.subr.bf16.mxu1 %v687_v63 }
 0x441   :  { %1083 = vmatpush3.bf16.msra.mxu0 %v687_v63  ;;  %1117 = vmatpush3.bf16.msra.mxu1 %v687_v63 }
 0x442   :  { %1084 = vmatprep.subr.bf16.mxu0 %v686_v59  ;;  %1110 = vmatprep.subr.bf16.mxu1 %v686_v59 }
 0x445   :  { %1085 = vmatpush3.bf16.msra.mxu0 %v686_v59  ;;  %1118 = vmatpush3.bf16.msra.mxu1 %v686_v59 }
 0x446   :  { %1086 = vmatprep.subr.bf16.mxu0 %v685_v3  ;;  %1111 = vmatprep.subr.bf16.mxu1 %v685_v3 }
 0x449   :  { %1087 = vmatpush3.bf16.msra.mxu0 %v685_v3  ;;  %1119 = vmatpush3.bf16.msra.mxu1 %v685_v3 }
 0x44c   :  { %1089 = vmatmul.mubr.bf16.vlgmr.msra.gmra.mxu0 %v1284_v25  ;;  %1097 = vmatmul.mubr.bf16.vlgmr.msra.gmra.mxu1 %v1296_v29 }
 0x44d   :  { %1092 = vmatprep.mubr.bf16.mxu0 %v1286_v26  ;;  %1100 = vmatprep.mubr.bf16.mxu1 %v1298_v30 }
 0x454   :  { %1093 = vmatmul.mubr.bf16.gmra.mxu0 %v1290_v27  ;;  %1101 = vmatmul.mubr.bf16.gmra.mxu1 %v1302_v31 }
 0x50c   :  { %v1090_v21 = vpop.f32.mrf.mxu0  ;;  %v1098_v19 = vpop.f32.mrf.mxu1 }
 0x50d   :  { %v792_v57 = vmul.f32 0.5, %v1090_v21  ;;  %v800_v28 = vmul.f32 0.5, %v1098_v19 }
 0x50e   :  { %v727_v4 = vpop.f32.mrf.mxu0  ;;  %v759_v6 = vpop.f32.mrf.mxu1 }
 0x50f   :  { %v808_v7 = vadd.f32 %v792_v57, %v1363_v45  ;;  %v816_v25 = vadd.f32 %v800_v28, %v1330_v60  ;;  %v790_v61 = vmul.f32 0.5, %v727_v4  ;;  %v798_v29 = vmul.f32 0.5, %v759_v6 }
 0x510   :  { %v1091_v12 = vpop.f32.mrf.mxu0  ;;  %v1099_v26 = vpop.f32.mrf.mxu1 }
 0x511   :  { %824 = vst [vmem:[#allocation7 + $0x10] sm:$0xff] %v808_v7  ;;  %832 = vst [vmem:[#allocation7 + $0x50] sm:$0xff] %v816_v25  ;;  %v806_v27 = vadd.f32 %v790_v61, %v1373_v49  ;;  %v814_v30 = vadd.f32 %v798_v29, %v1339_v5  ;;  %v793_v31 = vmul.f32 0.5, %v1091_v12  ;;  %v801_v58 = vmul.f32 0.5, %v1099_v26 }
 0x512   :  { %v730_v35 = vpop.f32.mrf.mxu0  ;;  %v762_v10 = vpop.f32.mrf.mxu1 }
 0x513   :  { %822 = vst [vmem:[#allocation7] sm:$0xff] %v806_v27  ;;  %830 = vst [vmem:[#allocation7 + $0x40] sm:$0xff] %v814_v30  ;;  %v809_v45 = vadd.f32 %v793_v31, %v1359_v13  ;;  %v817_v60 = vadd.f32 %v801_v58, %v1325_v54  ;;  %v791_v22 = vmul.f32 0.5, %v730_v35  ;;  %v799_v42 = vmul.f32 0.5, %v762_v10 }
 0x514   :  { %v1094_v43 = vpop.f32.mrf.mxu0  ;;  %v1102_v41 = vpop.f32.mrf.mxu1 }
 0x515   :  { %825 = vst [vmem:[#allocation7 + $0x18] sm:$0xff] %v809_v45  ;;  %833 = vst [vmem:[#allocation7 + $0x58] sm:$0xff] %v817_v60  ;;  %v807_v49 = vadd.f32 %v791_v22, %v1368_v48  ;;  %v815_v5 = vadd.f32 %v799_v42, %v1335_v1  ;;  %v796_v36 = vmul.f32 0.5, %v1094_v43  ;;  %v804_v44 = vmul.f32 0.5, %v1102_v41 }
 0x516   :  { %v743_v24 = vpop.f32.mrf.mxu0  ;;  %v775_v17 = vpop.f32.mrf.mxu1 }
 0x517   :  { %823 = vst [vmem:[#allocation7 + $0x8] sm:$0xff] %v807_v49  ;;  %831 = vst [vmem:[#allocation7 + $0x48] sm:$0xff] %v815_v5  ;;  %v812_v13 = vadd.f32 %v796_v36, %v1347_v18  ;;  %v820_v54 = vadd.f32 %v804_v44, %v1313_v46  ;;  %v794_v39 = vmul.f32 0.5, %v743_v24  ;;  %v802_v16 = vmul.f32 0.5, %v775_v17 }
 0x518   :  { %v1095_v14 = vpop.f32.mrf.mxu0  ;;  %v1103_v37 = vpop.f32.mrf.mxu1 }
 0x519   :  { %828 = vst [vmem:[#allocation7 + $0x30] sm:$0xff] %v812_v13  ;;  %836 = vst [vmem:[#allocation7 + $0x70] sm:$0xff] %v820_v54  ;;  %v810_v48 = vadd.f32 %v794_v39, %v1355_v38  ;;  %v818_v1 = vadd.f32 %v802_v16, %v1319_v50  ;;  %v797_v40 = vmul.f32 0.5, %v1095_v14  ;;  %v805_v15 = vmul.f32 0.5, %v1103_v37 }
 0x51a   :  { %v746_v20 = vpop.f32.mrf.mxu0  ;;  %v778_v33 = vpop.f32.mrf.mxu1 }
 0x51b   :  { %826 = vst [vmem:[#allocation7 + $0x20] sm:$0xff] %v810_v48  ;;  %834 = vst [vmem:[#allocation7 + $0x60] sm:$0xff] %v818_v1  ;;  %v813_v46 = vadd.f32 %v797_v40, %v1343_v8  ;;  %v821_v18 = vadd.f32 %v805_v15, %v1316_v47  ;;  %v795_v32 = vmul.f32 0.5, %v746_v20  ;;  %v803_v23 = vmul.f32 0.5, %v778_v33 }
 0x51d   :  { %829 = vst [vmem:[#allocation7 + $0x38] sm:$0xff] %v813_v46  ;;  %837 = vst [vmem:[#allocation7 + $0x78] sm:$0xff] %v821_v18  ;;  %v811_v38 = vadd.f32 %v795_v32, %v1351_v9  ;;  %v819_v50 = vadd.f32 %v803_v23, %v1322_v51 }
 0x51f   :  { %827 = vst [vmem:[#allocation7 + $0x28] sm:$0xff] %v811_v38  ;;  %835 = vst [vmem:[#allocation7 + $0x68] sm:$0xff] %v819_v50 }
 0x520   :  { %1186 = shalt.err (!%p1183_p0)
}
 0x521   :  { %849 = dma.vmem_to_hbm [thread:$0]  %s844_s1, 2048, %s1487_s2, [#allocation4], %s1205_s19, %s1205_s19, %s1206_s20  }
 0x522   :  { %1199 = dma.done.wait [#allocation4], 2048  }
 0x523   :  { %1200 = vsyncadd [#allocation4], 4294965248 }
 0x524   :  { %853 = vsyncpa [#allocation3], 1 }
 0x525   :  { %854 = vsyncpa [#allocation6], 1 }
 0x526   :  { %855 = vsyncpa [#allocation4], 1 }

</bundles_post_ra>
